<compile_context>
chip_gen: v6e
topology: v6e:2x2x1
jax: 0.10.0
libtpu: 0.0.40
codegen_flags: <defaults>
</compile_context>

<pallas_src>
import jax
import jax.numpy as jnp
from jax.experimental import pallas as pl
from jax.experimental.pallas import tpu as pltpu

LEAK = 0.1
NUM_FOLDS = 4
FOLD_WIDTH = 2          # Fold(2) x 4
NUM_CLASSES = 2         # nn.Linear(2, 2)
LANES = 128


def _round_up(x, m):
    return ((x + m - 1) // m) * m


def _origami_kernel(x_ref, n_ref, ns_ref, wc_ref, bc_ref, out_ref):
    """One batch tile of the forward pass: 4 folds + final linear ("cut").

    x_ref  : (TB, Wp) f32  zero-padded input rows
    n_ref  : (4, Wp)  f32  raw fold normals (zero-padded past true width)
    ns_ref : (4, Wp)  f32  pre-scaled normals (2/||n||^2) * n
    wc_ref : (Wp, Np) f32  cut weight (zero rows/cols past true sizes)
    bc_ref : (1, Np)  f32  cut bias (zero-padded)
    out_ref: (TB, Np) f32
    """
    x = x_ref[...]
    # Unrolled Python loop keeps the short serial fold chain fully visible
    # to the LLO scheduler.
    for k in range(NUM_FOLDS):
        n = n_ref[pl.ds(k, 1), :]                       # (1, Wp)
        ns = ns_ref[pl.ds(k, 1), :]                     # (1, Wp)
        t = jnp.sum(x * n, axis=1, keepdims=True)       # raw projection <x, n>
        a = jnp.where(t > 0.0, t, LEAK * t)             # leaky_relu (pos. homogeneous)
        x = x - a * ns                                  # == x - 2*leaky_relu(t/||n||^2)*n
    out_ref[...] = (jnp.dot(x, wc_ref[...], preferred_element_type=jnp.float32)
                    + bc_ref[...])


def origami_toy2(x, normals, w_cut, b_cut, *, tile_b=512):
    """Full OrigamiToy2 forward.  x: (B, F) or (B, ...) flattened to (B, F)."""
    if x.ndim > 2:
        x = x.reshape(x.shape[0], -1)
    B, F = x.shape
    assert F == FOLD_WIDTH, (F, FOLD_WIDTH)

    Wp = _round_up(FOLD_WIDTH, LANES)      # lane-aligned feature width (128)
    Np = _round_up(NUM_CLASSES, LANES)     # lane-dense output width (128)

    # Lane-pad parameters once (they stay resident across the batch grid).
    nn = jnp.sum(normals * normals, axis=1, keepdims=True)            # (4, 1)
    n_pad = jnp.pad(normals.astype(jnp.float32),
                    ((0, 0), (0, Wp - FOLD_WIDTH)))                    # (4, Wp)
    ns_pad = (2.0 / nn) * n_pad                                        # (4, Wp)
    wc_pad = jnp.pad(w_cut.astype(jnp.float32),
                     ((0, Wp - FOLD_WIDTH), (0, Np - NUM_CLASSES)))    # (Wp, Np)
    bc_pad = jnp.pad(b_cut.astype(jnp.float32).reshape(1, -1),
                     ((0, 0), (0, Np - NUM_CLASSES)))                  # (1, Np)

    # Batch tiling: TB is a multiple of 8 (f32 sublane), capped for VMEM.
    TB = min(tile_b, _round_up(B, 8))
    pB = _round_up(B, TB)
    x_pad = jnp.pad(x.astype(jnp.float32), ((0, pB - B), (0, Wp - F)))

    out = pl.pallas_call(
        _origami_kernel,
        out_shape=jax.ShapeDtypeStruct((pB, Np), jnp.float32),
        grid=(pB // TB,),
        in_specs=[
            pl.BlockSpec((TB, Wp), lambda i: (i, 0)),          # x tiles (pipelined)
            pl.BlockSpec((NUM_FOLDS, Wp), lambda i: (0, 0)),   # raw normals (resident)
            pl.BlockSpec((NUM_FOLDS, Wp), lambda i: (0, 0)),   # scaled normals (resident)
            pl.BlockSpec((Wp, Np), lambda i: (0, 0)),          # cut weight (resident)
            pl.BlockSpec((1, Np), lambda i: (0, 0)),           # cut bias (resident)
        ],
        out_specs=pl.BlockSpec((TB, Np), lambda i: (i, 0)),
        compiler_params=pltpu.CompilerParams(
            dimension_semantics=("parallel",),
            vmem_limit_bytes=32 * 1024 * 1024,
        ),
    )(x_pad, n_pad, ns_pad, wc_pad, bc_pad)

    return out[:B, :NUM_CLASSES]


def reference(x, normals, w_cut, b_cut):
    """Pure-JAX mirror of the (reconstructed) PyTorch forward."""
    if x.ndim > 2:
        x = x.reshape(x.shape[0], -1)
    x = x.astype(jnp.float32)
    for k in range(NUM_FOLDS):
        n = normals[k]
        t = (x @ n) / jnp.sum(n * n)
        a = jnp.where(t > 0.0, t, LEAK * t)
        x = x - 2.0 * a[:, None] * n[None, :]
    return x @ w_cut + b_cut


if __name__ == "__main__":
    key = jax.random.PRNGKey(0)
    kx, kn, kw, kb = jax.random.split(key, 4)

    # NCHW-like input that flattens to 2 features: (2, 2, 1, 1) -> (2, 2)
    x_img = jax.random.normal(kx, (2, 2, 1, 1), jnp.float32)

    normals = jax.random.normal(kn, (NUM_FOLDS, FOLD_WIDTH), jnp.float32)
    w_cut = jax.random.normal(kw, (FOLD_WIDTH, NUM_CLASSES), jnp.float32) / jnp.sqrt(2.0)
    b_cut = 0.01 * jax.random.normal(kb, (NUM_CLASSES,), jnp.float32)

    out = origami_toy2(x_img, normals, w_cut, b_cut)
    out = jax.block_until_ready(out)

    ref = reference(x_img, normals, w_cut, b_cut)
    assert out.shape == (x_img.shape[0], NUM_CLASSES), out.shape
    assert jnp.allclose(out, ref, atol=1e-5, rtol=1e-5), (out, ref)
    print("KERNEL_OK")
</pallas_src>

<mosaic_0001>
module attributes {stable_mosaic.version = 11 : i64} {
  func.func @_origami_kernel(%arg0: i32, %arg1: memref<8x128xf32, #tpu.memory_space<vmem>>, %arg2: memref<4x128xf32, #tpu.memory_space<vmem>>, %arg3: memref<4x128xf32, #tpu.memory_space<vmem>>, %arg4: memref<128x128xf32, #tpu.memory_space<vmem>>, %arg5: memref<1x128xf32, #tpu.memory_space<vmem>>, %arg6: memref<8x128xf32, #tpu.memory_space<vmem>>) attributes {dimension_semantics = [#tpu.dimension_semantics<parallel>], iteration_bounds = array<i64: 1>, scalar_prefetch = 0 : i64, scratch_operands = 0 : i64, tpu.core_type = #tpu.core_type<tc>, window_params = [{transform_indices = @transform_0, window_bounds = array<i64: 8, 128>}, {pipeline_mode = #tpu.pipeline_mode<synchronous>, transform_indices = @transform_1, window_bounds = array<i64: 4, 128>}, {pipeline_mode = #tpu.pipeline_mode<synchronous>, transform_indices = @transform_2, window_bounds = array<i64: 4, 128>}, {pipeline_mode = #tpu.pipeline_mode<synchronous>, transform_indices = @transform_3, window_bounds = array<i64: 128, 128>}, {pipeline_mode = #tpu.pipeline_mode<synchronous>, transform_indices = @transform_4, window_bounds = array<i64: 1, 128>}, {transform_indices = @transform_5, window_bounds = array<i64: 8, 128>}]} {
    %c0 = arith.constant 0 : index
    %c0_0 = arith.constant 0 : index
    %0 = vector.load %arg1[%c0, %c0_0] : memref<8x128xf32, #tpu.memory_space<vmem>>, vector<8x128xf32>
    %c0_1 = arith.constant 0 : index
    %c0_2 = arith.constant 0 : index
    %1 = vector.load %arg2[%c0_1, %c0_2] : memref<4x128xf32, #tpu.memory_space<vmem>>, vector<1x128xf32>
    %c0_3 = arith.constant 0 : index
    %c0_4 = arith.constant 0 : index
    %2 = vector.load %arg3[%c0_3, %c0_4] : memref<4x128xf32, #tpu.memory_space<vmem>>, vector<1x128xf32>
    %3 = vector.broadcast %1 : vector<1x128xf32> to vector<8x128xf32>
    %4 = arith.mulf %0, %3 : vector<8x128xf32>
    %cst = arith.constant dense<0.000000e+00> : vector<8xf32>
    %5 = vector.multi_reduction <add>, %4, %cst [1] : vector<8x128xf32> to vector<8xf32>
    %6 = vector.shape_cast %5 : vector<8xf32> to vector<8x1xf32>
    %cst_5 = arith.constant 0.000000e+00 : f32
    %7 = vector.broadcast %cst_5 : f32 to vector<8x1xf32>
    %8 = arith.cmpf ogt, %6, %7 : vector<8x1xf32>
    %cst_6 = arith.constant 1.000000e-01 : f32
    %9 = vector.broadcast %cst_6 : f32 to vector<8x1xf32>
    %10 = arith.mulf %9, %6 : vector<8x1xf32>
    %11 = arith.select %8, %6, %10 : vector<8x1xi1>, vector<8x1xf32>
    %12 = vector.broadcast %11 : vector<8x1xf32> to vector<8x128xf32>
    %13 = vector.broadcast %2 : vector<1x128xf32> to vector<8x128xf32>
    %14 = arith.mulf %12, %13 : vector<8x128xf32>
    %15 = arith.subf %0, %14 : vector<8x128xf32>
    %c1 = arith.constant 1 : index
    %c0_7 = arith.constant 0 : index
    %16 = vector.load %arg2[%c1, %c0_7] : memref<4x128xf32, #tpu.memory_space<vmem>>, vector<1x128xf32>
    %c1_8 = arith.constant 1 : index
    %c0_9 = arith.constant 0 : index
    %17 = vector.load %arg3[%c1_8, %c0_9] : memref<4x128xf32, #tpu.memory_space<vmem>>, vector<1x128xf32>
    %18 = vector.broadcast %16 : vector<1x128xf32> to vector<8x128xf32>
    %19 = arith.mulf %15, %18 : vector<8x128xf32>
    %cst_10 = arith.constant dense<0.000000e+00> : vector<8xf32>
    %20 = vector.multi_reduction <add>, %19, %cst_10 [1] : vector<8x128xf32> to vector<8xf32>
    %21 = vector.shape_cast %20 : vector<8xf32> to vector<8x1xf32>
    %cst_11 = arith.constant 0.000000e+00 : f32
    %22 = vector.broadcast %cst_11 : f32 to vector<8x1xf32>
    %23 = arith.cmpf ogt, %21, %22 : vector<8x1xf32>
    %cst_12 = arith.constant 1.000000e-01 : f32
    %24 = vector.broadcast %cst_12 : f32 to vector<8x1xf32>
    %25 = arith.mulf %24, %21 : vector<8x1xf32>
    %26 = arith.select %23, %21, %25 : vector<8x1xi1>, vector<8x1xf32>
    %27 = vector.broadcast %26 : vector<8x1xf32> to vector<8x128xf32>
    %28 = vector.broadcast %17 : vector<1x128xf32> to vector<8x128xf32>
    %29 = arith.mulf %27, %28 : vector<8x128xf32>
    %30 = arith.subf %15, %29 : vector<8x128xf32>
    %c2 = arith.constant 2 : index
    %c0_13 = arith.constant 0 : index
    %31 = vector.load %arg2[%c2, %c0_13] : memref<4x128xf32, #tpu.memory_space<vmem>>, vector<1x128xf32>
    %c2_14 = arith.constant 2 : index
    %c0_15 = arith.constant 0 : index
    %32 = vector.load %arg3[%c2_14, %c0_15] : memref<4x128xf32, #tpu.memory_space<vmem>>, vector<1x128xf32>
    %33 = vector.broadcast %31 : vector<1x128xf32> to vector<8x128xf32>
    %34 = arith.mulf %30, %33 : vector<8x128xf32>
    %cst_16 = arith.constant dense<0.000000e+00> : vector<8xf32>
    %35 = vector.multi_reduction <add>, %34, %cst_16 [1] : vector<8x128xf32> to vector<8xf32>
    %36 = vector.shape_cast %35 : vector<8xf32> to vector<8x1xf32>
    %cst_17 = arith.constant 0.000000e+00 : f32
    %37 = vector.broadcast %cst_17 : f32 to vector<8x1xf32>
    %38 = arith.cmpf ogt, %36, %37 : vector<8x1xf32>
    %cst_18 = arith.constant 1.000000e-01 : f32
    %39 = vector.broadcast %cst_18 : f32 to vector<8x1xf32>
    %40 = arith.mulf %39, %36 : vector<8x1xf32>
    %41 = arith.select %38, %36, %40 : vector<8x1xi1>, vector<8x1xf32>
    %42 = vector.broadcast %41 : vector<8x1xf32> to vector<8x128xf32>
    %43 = vector.broadcast %32 : vector<1x128xf32> to vector<8x128xf32>
    %44 = arith.mulf %42, %43 : vector<8x128xf32>
    %45 = arith.subf %30, %44 : vector<8x128xf32>
    %c3 = arith.constant 3 : index
    %c0_19 = arith.constant 0 : index
    %46 = vector.load %arg2[%c3, %c0_19] : memref<4x128xf32, #tpu.memory_space<vmem>>, vector<1x128xf32>
    %c3_20 = arith.constant 3 : index
    %c0_21 = arith.constant 0 : index
    %47 = vector.load %arg3[%c3_20, %c0_21] : memref<4x128xf32, #tpu.memory_space<vmem>>, vector<1x128xf32>
    %48 = vector.broadcast %46 : vector<1x128xf32> to vector<8x128xf32>
    %49 = arith.mulf %45, %48 : vector<8x128xf32>
    %cst_22 = arith.constant dense<0.000000e+00> : vector<8xf32>
    %50 = vector.multi_reduction <add>, %49, %cst_22 [1] : vector<8x128xf32> to vector<8xf32>
    %51 = vector.shape_cast %50 : vector<8xf32> to vector<8x1xf32>
    %cst_23 = arith.constant 0.000000e+00 : f32
    %52 = vector.broadcast %cst_23 : f32 to vector<8x1xf32>
    %53 = arith.cmpf ogt, %51, %52 : vector<8x1xf32>
    %cst_24 = arith.constant 1.000000e-01 : f32
    %54 = vector.broadcast %cst_24 : f32 to vector<8x1xf32>
    %55 = arith.mulf %54, %51 : vector<8x1xf32>
    %56 = arith.select %53, %51, %55 : vector<8x1xi1>, vector<8x1xf32>
    %57 = vector.broadcast %56 : vector<8x1xf32> to vector<8x128xf32>
    %58 = vector.broadcast %47 : vector<1x128xf32> to vector<8x128xf32>
    %59 = arith.mulf %57, %58 : vector<8x128xf32>
    %60 = arith.subf %45, %59 : vector<8x128xf32>
    %c0_25 = arith.constant 0 : index
    %c0_26 = arith.constant 0 : index
    %61 = vector.load %arg4[%c0_25, %c0_26] : memref<128x128xf32, #tpu.memory_space<vmem>>, vector<128x128xf32>
    %cst_27 = arith.constant dense<0.000000e+00> : vector<8x128xf32>
    %62 = tpu.matmul %60, %61, %cst_27 {dimension_numbers = #tpu.dot_dimension_numbers<[1], [0], [0], [1], [0, 0, 1, 1], [], []>} : vector<8x128xf32>, vector<128x128xf32>, vector<8x128xf32> -> vector<8x128xf32>
    %c0_28 = arith.constant 0 : index
    %c0_29 = arith.constant 0 : index
    %63 = vector.load %arg5[%c0_28, %c0_29] : memref<1x128xf32, #tpu.memory_space<vmem>>, vector<1x128xf32>
    %64 = vector.broadcast %63 : vector<1x128xf32> to vector<8x128xf32>
    %65 = arith.addf %62, %64 : vector<8x128xf32>
    %c0_30 = arith.constant 0 : index
    %c0_31 = arith.constant 0 : index
    %66 = vector.load %arg6[%c0_30, %c0_31] : memref<8x128xf32, #tpu.memory_space<vmem>>, vector<8x128xf32>
    tpu.vector_store %arg6[%c0_30, %c0_31], %65 {strides = array<i32>} : memref<8x128xf32, #tpu.memory_space<vmem>>, vector<8x128xf32>,
    return
  }
  func.func @transform_0(%arg0: i32) -> (i32, i32) {
    %c0_i32 = arith.constant 0 : i32
    %c0_i32_0 = arith.constant 0 : i32
    return %arg0, %c0_i32 : i32, i32
  }
  func.func @transform_1(%arg0: i32) -> (i32, i32) {
    %c0_i32 = arith.constant 0 : i32
    %c0_i32_0 = arith.constant 0 : i32
    %c0_i32_1 = arith.constant 0 : i32
    return %c0_i32, %c0_i32_0 : i32, i32
  }
  func.func @transform_2(%arg0: i32) -> (i32, i32) {
    %c0_i32 = arith.constant 0 : i32
    %c0_i32_0 = arith.constant 0 : i32
    %c0_i32_1 = arith.constant 0 : i32
    return %c0_i32, %c0_i32_0 : i32, i32
  }
  func.func @transform_3(%arg0: i32) -> (i32, i32) {
    %c0_i32 = arith.constant 0 : i32
    %c0_i32_0 = arith.constant 0 : i32
    %c0_i32_1 = arith.constant 0 : i32
    return %c0_i32, %c0_i32_0 : i32, i32
  }
  func.func @transform_4(%arg0: i32) -> (i32, i32) {
    %c0_i32 = arith.constant 0 : i32
    %c0_i32_0 = arith.constant 0 : i32
    %c0_i32_1 = arith.constant 0 : i32
    return %c0_i32, %c0_i32_0 : i32, i32
  }
  func.func @transform_5(%arg0: i32) -> (i32, i32) {
    %c0_i32 = arith.constant 0 : i32
    %c0_i32_0 = arith.constant 0 : i32
    return %arg0, %c0_i32 : i32, i32
  }
}

</mosaic_0001>

<bundles_post_ra>
// kernel: tpu_custom_call.1
= control target key start
LH: loop header
LB: loop body
LE: loop exit
PB: predicated region body
PF: predicated region fallthrough
CT: control target
= control target key end

     0   :  { %10 = vsyncpa [#allocation3], 0  ;;  %s489_s0 = inlined_call_operand.hbm [shape: f32[8,128], index: 0, kind: input, shape index: {}]   ;;  %s490_s1 = inlined_call_operand.hbm [shape: f32[4,128], index: 1, kind: input, shape index: {}]   ;;  %s491_s2 = inlined_call_operand.hbm [shape: f32[4,128], index: 2, kind: input, shape index: {}]   ;;  %s492_s3 = inlined_call_operand.hbm [shape: f32[128,128], index: 3, kind: input, shape index: {}]   ;;  %s493_s4 = inlined_call_operand.vmem [shape: f32[1,128], index: 4, kind: input, shape index: {}]   ;;  %s494_s5 = inlined_call_operand.hbm [shape: f32[8,128], index: 5, kind: output, shape index: {}]  }
   0x1   :  { %11 = vsyncpa [#allocation6], 0 }
   0x2   :  { %12 = vsyncpa [#allocation9], 0 }
   0x3   :  { %13 = vsyncpa [#allocation4], 0  ;;  %s432_s18 = smov [#allocation5]   ;;  %s433_s20 = smov [#allocation2]  }
   0x4   :  { %s30_s19 = sshll.u32 %s432_s18, 4  ;;  %s20_s21 = sshll.u32 %s433_s20, 4  ;;  %s31_s19 = int_to_ptr.vmem [resolvable:$true] %s30_s19  ;;  %s21_s21 = int_to_ptr.vmem [resolvable:$true] %s20_s21 }
   0x5   :  { %s332_s22 = scalar_lea.vmem %s31_s19, 64  ;;  %p337_p1 = scmp.lt.s32.totalorder %s31_s19, %s31_s19 }
   0x6   :  { %p333_p0 = scmp.ne.s32.totalorder %s31_s19, %s332_s22  ;;  %p338_p2 = scmp.lt.s32.totalorder %s332_s22, %s332_s22 }
   0x8   :  { %p339_p3 = por %p338_p2, %p337_p1 }
   0xa   :  { %p340_p4 = pnand %p339_p3, %p333_p0 }
   0xc   :  { %343 = shalt.err (!%p340_p4)
}
   0xd   :  { %33 = dma.hbm_to_vmem [thread:$0]  %s490_s1, 64, %s31_s19, [#allocation6]  }
   0xe   :  { %s352_s25 = scalar_lea.vmem %s21_s21, 128  ;;  %p357_p6 = scmp.lt.s32.totalorder %s21_s21, %s21_s21 }
   0xf   :  { %p353_p5 = scmp.ne.s32.totalorder %s21_s21, %s352_s25  ;;  %p358_p7 = scmp.lt.s32.totalorder %s352_s25, %s352_s25 }
  0x11   :  { %p359_p8 = por %p358_p7, %p357_p6 }
  0x13   :  { %p360_p9 = pnand %p359_p8, %p353_p5 }
  0x15   :  { %363 = shalt.err (!%p360_p9)
}
  0x16   :  { %23 = dma.hbm_to_vmem [thread:$0]  %s489_s0, 128, %s21_s21, [#allocation3]  }
  0x17   :  { %s434_s28 = smov [#allocation7]   ;;  %s435_s30 = smov [#allocation8]  }
  0x18   :  { %s40_s29 = sshll.u32 %s434_s28, 4  ;;  %s49_s6 = sshll.u32 %s435_s30, 4  ;;  %s41_s29 = int_to_ptr.vmem [resolvable:$true] %s40_s29  ;;  %s50_s6 = int_to_ptr.vmem [resolvable:$true] %s49_s6 }
  0x19   :  { %s372_s7 = scalar_lea.vmem %s41_s29, 64  ;;  %p377_p11 = scmp.lt.s32.totalorder %s41_s29, %s41_s29 }
  0x1a   :  { %p373_p10 = scmp.ne.s32.totalorder %s41_s29, %s372_s7  ;;  %p378_p12 = scmp.lt.s32.totalorder %s372_s7, %s372_s7 }
  0x1c   :  { %p379_p13 = por %p378_p12, %p377_p11 }
  0x1e   :  { %p380_p0 = pnand %p379_p13, %p373_p10 }
  0x20   :  { %383 = shalt.err (!%p380_p0)
}
  0x21   :  { %43 = dma.hbm_to_vmem [thread:$0]  %s491_s2, 64, %s41_s29, [#allocation6]  }
  0x22   :  { %s392_s9 = scalar_lea.vmem %s50_s6, 2048  ;;  %p397_p2 = scmp.lt.s32.totalorder %s50_s6, %s50_s6 }
  0x23   :  { %p393_p1 = scmp.ne.s32.totalorder %s50_s6, %s392_s9  ;;  %p398_p3 = scmp.lt.s32.totalorder %s392_s9, %s392_s9 }
  0x25   :  { %p399_p4 = por %p398_p3, %p397_p2 }
  0x27   :  { %p400_p5 = pnand %p399_p4, %p393_p1 }
  0x29   :  { %403 = shalt.err (!%p400_p5)
}
  0x2a   :  { %s436_s0 = smov 128   ;;  %s437_s10 = smov 8  }
  0x2b   :  { %55 = dma.hbm_to_vmem [thread:$0]  %s492_s3, 2048, %s50_s6, [#allocation9], %s436_s0, %s436_s0, %s437_s10  }
  0x2c   :  { %424 = dma.done.wait [#allocation3], 128  }
  0x2d   :  { %425 = vsyncadd [#allocation3], 4294967168 }
  0x2e   :  { %426 = dma.done.wait [#allocation6], 128  }
  0x2f   :  { %427 = vsyncadd [#allocation6], 4294967168 }
  0x30   :  { %428 = dma.done.wait [#allocation9], 2048  }
  0x31   :  { %429 = vsyncadd [#allocation9], 4294965248  ;;  %v70_v0 = vld [vmem:[#allocation2] sm:$0xff]  ;;  %v254_v1 = vld [vmem:[#allocation5] ss:$0 sm:$0xff]  ;;  %v438_v20 = vmov 0.0  }
  0x32   :  { %v77_v2 = vmul.f32 %v254_v1, %v70_v0  ;;  %v255_v4 = vld [vmem:[#allocation7] ss:$0 sm:$0xff]  ;;  %v256_v8 = vld [vmem:[#allocation5 + $0x1] ss:$0 sm:$0xff]  ;;  %v257_v12 = vld [vmem:[#allocation7 + $0x1] ss:$0 sm:$0xff]  ;;  %280 = vmatprep.subr.mxu0 %v438_v20 }
  0x33   :  { %v258_v16 = vld [vmem:[#allocation5 + $0x2] ss:$0 sm:$0xff]  ;;  %v157_v21 = vld [vmem:[#allocation8 + $0x70] sm:$0xff]  ;;  %v156_v22 = vld [vmem:[#allocation8 + $0x68] sm:$0xff]  ;;  %vm439_vm3 = vmmov 0   ;;  %s440_s13 = smov [#allocation10]  }
  0x34   :  { %78 = vadd.xlane.f32.xlu0 %v77_v2  ;;  %v158_v19 = vld [vmem:[#allocation8 + $0x78] sm:$0xff]  ;;  %v155_v23 = vld [vmem:[#allocation8 + $0x60] sm:$0xff]  ;;  %v153_v25 = vld [vmem:[#allocation8 + $0x50] sm:$0xff]  ;;  %312 = vmatprep.mubr.msk.f32.mxu0 %vm439_vm3, %v438_v20  ;;  %s243_s14 = sshll.u32 %s440_s13, 4  ;;  %s244_s14 = int_to_ptr.vmem [resolvable:$true] %s243_s14 }
  0x35   :  { %281 = vmatpush3.msra.mxu0 %v158_v19  ;;  %v154_v24 = vld [vmem:[#allocation8 + $0x58] sm:$0xff]  ;;  %v152_v26 = vld [vmem:[#allocation8 + $0x48] sm:$0xff]  ;;  %v151_v27 = vld [vmem:[#allocation8 + $0x40] sm:$0xff]  ;;  %s404_s15 = scalar_lea.vmem %s244_s14, 128  ;;  %p409_p7 = scmp.lt.s32.totalorder %s244_s14, %s244_s14 }
  0x36   :  { %282 = vmatprep.subr.mxu0 %v438_v20  ;;  %v150_v28 = vld [vmem:[#allocation8 + $0x38] sm:$0xff]  ;;  %v149_v29 = vld [vmem:[#allocation8 + $0x30] sm:$0xff]  ;;  %v148_v30 = vld [vmem:[#allocation8 + $0x28] sm:$0xff]  ;;  %p405_p6 = scmp.ne.s32.totalorder %s244_s14, %s404_s15  ;;  %p410_p8 = scmp.lt.s32.totalorder %s404_s15, %s404_s15 }
  0x37   :  { %283 = vmatpush3.msra.mxu0 %v157_v21  ;;  %v147_v31 = vld [vmem:[#allocation8 + $0x20] sm:$0xff]  ;;  %v259_v33 = vld [vmem:[#allocation7 + $0x2] ss:$0 sm:$0xff]  ;;  %v260_v37 = vld [vmem:[#allocation5 + $0x3] ss:$0 sm:$0xff] }
  0x38   :  { %284 = vmatprep.subr.mxu0 %v438_v20  ;;  %v146_v40 = vld [vmem:[#allocation8 + $0x18] sm:$0xff]  ;;  %v145_v41 = vld [vmem:[#allocation8 + $0x10] sm:$0xff]  ;;  %v144_v42 = vld [vmem:[#allocation8 + $0x8] sm:$0xff]  ;;  %p411_p9 = por %p410_p8, %p409_p7 }
  0x39   :  { %285 = vmatpush3.msra.mxu0 %v156_v22  ;;  %v143_v43 = vld [vmem:[#allocation8] sm:$0xff]  ;;  %v261_v45 = vld [vmem:[#allocation7 + $0x3] ss:$0 sm:$0xff]  ;;  %v262_v50 = vld [vmem:[%s493_s4] ss:$0 sm:$0xff] }
  0x3a   :  { %286 = vmatprep.subr.mxu0 %v438_v20  ;;  %p412_p10 = pnand %p411_p9, %p405_p6 }
  0x3b   :  { %287 = vmatpush3.msra.mxu0 %v155_v23 }
  0x3c   :  { %288 = vmatprep.subr.mxu0 %v438_v20 }
  0x3d   :  { %289 = vmatpush3.msra.mxu0 %v154_v24 }
  0x3e   :  { %290 = vmatprep.subr.mxu0 %v438_v20 }
  0x3f   :  { %291 = vmatpush3.msra.mxu0 %v153_v25 }
  0x40   :  { %292 = vmatprep.subr.mxu0 %v438_v20 }
  0x41   :  { %293 = vmatpush3.msra.mxu0 %v152_v26 }
  0x42   :  { %294 = vmatprep.subr.mxu0 %v438_v20 }
  0x43   :  { %295 = vmatpush3.msra.mxu0 %v151_v27 }
  0x44   :  { %296 = vmatprep.subr.mxu0 %v438_v20 }
  0x45   :  { %297 = vmatpush3.msra.mxu0 %v150_v28 }
  0x46   :  { %298 = vmatprep.subr.mxu0 %v438_v20 }
  0x47   :  { %299 = vmatpush3.msra.mxu0 %v149_v29 }
  0x48   :  { %300 = vmatprep.subr.mxu0 %v438_v20 }
  0x49   :  { %301 = vmatpush3.msra.mxu0 %v148_v30 }
  0x4a   :  { %302 = vmatprep.subr.mxu0 %v438_v20 }
  0x4b   :  { %303 = vmatpush3.msra.mxu0 %v147_v31 }
  0x4c   :  { %304 = vmatprep.subr.mxu0 %v438_v20 }
  0x4d   :  { %305 = vmatpush3.msra.mxu0 %v146_v40 }
  0x4e   :  { %306 = vmatprep.subr.mxu0 %v438_v20 }
  0x4f   :  { %307 = vmatpush3.msra.mxu0 %v145_v41 }
  0x50   :  { %308 = vmatprep.subr.mxu0 %v438_v20 }
  0x51   :  { %309 = vmatpush3.msra.mxu0 %v144_v42 }
  0x52   :  { %310 = vmatprep.subr.mxu0 %v438_v20 }
  0x53   :  { %311 = vmatpush3.msra.mxu0 %v143_v43 }
  0xbd   :  { %v79_v3 = vpop.xlane.xlu0 %78 }
  0xbe   :  { %vm80_vm0 = vcmp.gt.f32.partialorder %v79_v3, 0.0  ;;  %v81_v5 = vmul.f32 0.1, %v79_v3 }
  0xc0   :  { %v82_v6 = vsel %vm80_vm0, %v79_v3, %v81_v5 }
  0xc1   :  { %v87_v7 = vmul.f32 %v255_v4, %v82_v6 }
  0xc3   :  { %v88_v9 = vsub.f32 %v70_v0, %v87_v7 }
  0xc5   :  { %v95_v10 = vmul.f32 %v256_v8, %v88_v9 }
  0xc7   :  { %96 = vadd.xlane.f32.xlu0 %v95_v10 }
 0x150   :  { %v97_v11 = vpop.xlane.xlu0 %96 }
 0x151   :  { %vm98_vm1 = vcmp.gt.f32.partialorder %v97_v11, 0.0  ;;  %v99_v13 = vmul.f32 0.1, %v97_v11 }
 0x153   :  { %v100_v14 = vsel %vm98_vm1, %v97_v11, %v99_v13 }
 0x154   :  { %v105_v15 = vmul.f32 %v257_v12, %v100_v14 }
 0x156   :  { %v106_v17 = vsub.f32 %v88_v9, %v105_v15 }
 0x158   :  { %v113_v18 = vmul.f32 %v258_v16, %v106_v17 }
 0x15a   :  { %114 = vadd.xlane.f32.xlu1 %v113_v18 }
 0x1e3   :  { %v115_v32 = vpop.xlane.xlu1 %114 }
 0x1e4   :  { %vm116_vm2 = vcmp.gt.f32.partialorder %v115_v32, 0.0  ;;  %v117_v34 = vmul.f32 0.1, %v115_v32 }
 0x1e6   :  { %v118_v35 = vsel %vm116_vm2, %v115_v32, %v117_v34 }
 0x1e7   :  { %v123_v36 = vmul.f32 %v259_v33, %v118_v35 }
 0x1e9   :  { %v124_v38 = vsub.f32 %v106_v17, %v123_v36 }
 0x1eb   :  { %v131_v39 = vmul.f32 %v260_v37, %v124_v38 }
 0x1ed   :  { %132 = vadd.xlane.f32.xlu1 %v131_v39 }
 0x276   :  { %v133_v44 = vpop.xlane.xlu1 %132 }
 0x277   :  { %vm134_vm4 = vcmp.gt.f32.partialorder %v133_v44, 0.0  ;;  %v135_v46 = vmul.f32 0.1, %v133_v44 }
 0x279   :  { %v136_v47 = vsel %vm134_vm4, %v133_v44, %v135_v46 }
 0x27a   :  { %v141_v48 = vmul.f32 %v261_v45, %v136_v47 }
 0x27c   :  { %v142_v49 = vsub.f32 %v124_v38, %v141_v48 }
 0x27e   :  { %313 = vmatmul.mubr.f32.vlgmr.msra.gmra.mxu0 %v142_v49 }
 0x33e   :  { %v232_v51 = vpop.f32.mrf.mxu0 }
 0x33f   :  { %v233_v52 = vadd.f32 %v262_v50, %v232_v51 }
 0x340   :  { %v314_v53 = vpop.f32.mrf.mxu0 }
 0x341   :  { %236 = vst [vmem:[#allocation10] sm:$0xff] %v233_v52 }
 0x342   :  { %415 = shalt.err (!%p412_p10)
}
 0x343   :  { %246 = dma.vmem_to_hbm [thread:$0]  %s244_s14, 128, %s494_s5, [#allocation4]  }
 0x344   :  { %430 = dma.done.wait [#allocation4], 128  }
 0x345   :  { %431 = vsyncadd [#allocation4], 4294967168 }
 0x346   :  { %250 = vsyncpa [#allocation3], 1 }
 0x347   :  { %251 = vsyncpa [#allocation6], 1 }
 0x348   :  { %252 = vsyncpa [#allocation9], 1 }
 0x349   :  { %253 = vsyncpa [#allocation4], 1 }

</bundles_post_ra>
